<compile_context>
chip_gen: v7x
topology: tpu7x:2x2x1
jax: 0.10.0
libtpu: 0.0.40
codegen_flags: <defaults>
</compile_context>

<pallas_src>
import jax
import jax.numpy as jnp
from jax.experimental import pallas as pl
from jax.experimental.pallas import tpu as pltpu


_LANE = 128
_COL_CHOICES = (1024, 512, 256, 128)      # lane-dense widths, largest-first
_TILE_BYTES = 8 * 1024 * 1024             # ~8 MiB tiles (per-step overhead -> ~3-5%)
_VMEM_LIMIT = 48 * 1024 * 1024            # 32 MiB double-buffered tiles + headroom; safe on v7x
_PALLAS_MIN_ELEMS = 1 << 20               # below ~1M elems, fused XLA already hits roofline


def _negation_kernel(x_ref, o_ref):
    # Single VPU vsub per vreg with a splat immediate, kept in the input dtype.
    o_ref[...] = jnp.asarray(1, dtype=x_ref.dtype) - x_ref[...]


def _sublane(dtype):
    # Sub-32-bit dtypes pack along sublanes: f32 -> 8, bf16 -> 16, int8 -> 32.
    return 8 * max(1, 4 // jnp.dtype(dtype).itemsize)


def _pick_cols(n):
    for c in _COL_CHOICES:
        if n % c == 0:
            return c
    return None


@jax.jit
def negation_pallas(x):
    """1 - x via a tiled Pallas kernel (handles arbitrary shape/dtype)."""
    orig_shape = x.shape
    n = x.size
    if n == 0:
        return x

    dtype = x.dtype
    itemsize = jnp.dtype(dtype).itemsize
    sub = _sublane(dtype)

    cols = _pick_cols(n)
    padded = cols is None
    if not padded:
        # Zero-copy path: pure reshape view, minimal HBM traffic.
        rows = n // cols
        x2d = x.reshape(rows, cols)
        aliases = {}
    else:
        # Fallback: lane-pad into a fresh (rows, cols) slab. Since x2d is a
        # temporary, aliasing it to the output is copy-free for XLA.
        cols = 1024 if n >= 1024 else _LANE
        rows = pl.cdiv(pl.cdiv(n, cols), sub) * sub
        flat = jnp.pad(x.reshape(-1), (0, rows * cols - n))
        x2d = flat.reshape(rows, cols)
        aliases = {0: 0}

    # Tile size from a byte budget, rounded down to the sublane multiple.
    block_rows = max(sub, (_TILE_BYTES // (cols * itemsize)) // sub * sub)
    block_rows = min(rows, block_rows)      # full-extent block is always legal
    grid = (pl.cdiv(rows, block_rows),)     # partial last block is masked by Pallas

    out2d = pl.pallas_call(
        _negation_kernel,
        out_shape=jax.ShapeDtypeStruct((rows, cols), dtype),
        grid=grid,
        in_specs=[pl.BlockSpec((block_rows, cols), lambda i: (i, 0))],
        out_specs=pl.BlockSpec((block_rows, cols), lambda i: (i, 0)),
        input_output_aliases=aliases,
        compiler_params=pltpu.CompilerParams(
            dimension_semantics=("parallel",),
            vmem_limit_bytes=_VMEM_LIMIT,
        ),
    )(x2d)

    if padded:
        return out2d.reshape(-1)[:n].reshape(orig_shape)
    return out2d.reshape(orig_shape)


def negation(x):
    """NegationOperation.forward: 1 - x (dtype/shape preserving).

    Uses Pallas only when it adds zero extra HBM passes (large enough and
    lane-divisible); otherwise a single fused XLA elementwise pass is optimal.
    """
    n = x.size
    if n < _PALLAS_MIN_ELEMS or n % _LANE != 0:
        return jnp.asarray(1, dtype=x.dtype) - x
    return negation_pallas(x)


if __name__ == "__main__":
    key = jax.random.PRNGKey(0)
    k1, k2, k3 = jax.random.split(key, 3)

    # Module test shape: (batch=2, in_channels=32), matches LogicInferenceBase.test_forward.
    batch, in_channels = 2, 32
    x_small = jax.random.normal(k1, (batch, in_channels), dtype=jnp.float32)

    # 1) Force the Pallas kernel on the small input (padded fallback path).
    out_small = jax.block_until_ready(negation_pallas(x_small))
    assert out_small.shape == x_small.shape, out_small.shape
    assert out_small.dtype == x_small.dtype, out_small.dtype
    assert jnp.allclose(out_small, 1.0 - x_small, atol=1e-6), "pallas small mismatch"

    # 2) Dispatcher (plain-XLA fast path for tiny inputs).
    out_disp = jax.block_until_ready(negation(x_small))
    assert jnp.allclose(out_disp, 1.0 - x_small, atol=1e-6), "dispatch mismatch"

    # 3) Large, 1024-divisible input: zero-copy reshape path, 2-block grid with
    #    a masked partial last block (rows=3072, block_rows=2048).
    x_big = jax.random.normal(k2, (6, 512, 1024), dtype=jnp.float32)
    out_big = jax.block_until_ready(negation(x_big))
    assert out_big.shape == x_big.shape and out_big.dtype == x_big.dtype
    assert jnp.allclose(out_big, 1.0 - x_big, atol=1e-6), "pallas big mismatch"

    # 4) Non-128-divisible element count: exercises the padded fallback in-kernel.
    x_odd = jax.random.normal(k3, (3, 300, 1000), dtype=jnp.float32)
    out_odd = jax.block_until_ready(negation_pallas(x_odd))
    assert out_odd.shape == x_odd.shape
    assert jnp.allclose(out_odd, 1.0 - x_odd, atol=1e-6), "pallas odd mismatch"

    # 5) bf16: kernel stays in input dtype (no upcast inside the kernel).
    x_bf16 = x_small.astype(jnp.bfloat16)
    out_bf16 = jax.block_until_ready(negation_pallas(x_bf16))
    assert out_bf16.dtype == jnp.bfloat16, out_bf16.dtype
    assert jnp.allclose(out_bf16.astype(jnp.float32),
                        1.0 - x_bf16.astype(jnp.float32), atol=1e-2), "bf16 mismatch"

    print("KERNEL_OK")
</pallas_src>

<mosaic_0001>
module attributes {stable_mosaic.version = 11 : i64} {
  func.func @_negation_kernel(%arg0: i32, %arg1: memref<8x128xf32, #tpu.memory_space<vmem>>, %arg2: memref<8x128xf32, #tpu.memory_space<vmem>>) attributes {dimension_semantics = [#tpu.dimension_semantics<parallel>], iteration_bounds = array<i64: 1>, scalar_prefetch = 0 : i64, scratch_operands = 0 : i64, tpu.core_type = #tpu.core_type<tc>, window_params = [{transform_indices = @transform_0, window_bounds = array<i64: 8, 128>}, {transform_indices = @transform_1, window_bounds = array<i64: 8, 128>}]} {
    %c0 = arith.constant 0 : index
    %c0_0 = arith.constant 0 : index
    %0 = vector.load %arg1[%c0, %c0_0] : memref<8x128xf32, #tpu.memory_space<vmem>>, vector<8x128xf32>
    %cst = arith.constant 1.000000e+00 : f32
    %1 = vector.broadcast %cst : f32 to vector<8x128xf32>
    %2 = arith.subf %1, %0 : vector<8x128xf32>
    %c0_1 = arith.constant 0 : index
    %c0_2 = arith.constant 0 : index
    %3 = vector.load %arg2[%c0_1, %c0_2] : memref<8x128xf32, #tpu.memory_space<vmem>>, vector<8x128xf32>
    tpu.vector_store %arg2[%c0_1, %c0_2], %2 {strides = array<i32>} : memref<8x128xf32, #tpu.memory_space<vmem>>, vector<8x128xf32>,
    return
  }
  func.func @transform_0(%arg0: i32) -> (i32, i32) {
    %c0_i32 = arith.constant 0 : i32
    %c0_i32_0 = arith.constant 0 : i32
    return %arg0, %c0_i32 : i32, i32
  }
  func.func @transform_1(%arg0: i32) -> (i32, i32) {
    %c0_i32 = arith.constant 0 : i32
    %c0_i32_0 = arith.constant 0 : i32
    return %arg0, %c0_i32 : i32, i32
  }
}

</mosaic_0001>

<bundles_post_ra>
// kernel: negation_pallas.1
= control target key start
LH: loop header
LB: loop body
LE: loop exit
PB: predicated region body
PF: predicated region fallthrough
CT: control target
= control target key end

     0   :  { %s31_s0 = inlined_call_operand.vmem [shape: f32[8,128], index: 0, kind: input, shape index: {}, may-alias: {0,1}]   ;;  %s32_s1 = inlined_call_operand.vmem [shape: f32[8,128], index: 1, kind: output, shape index: {}, may-alias: {0,1}]  }
   0x1   :  { %v8_v0 = vld [vmem:[%s31_s0] sm:$0xff] }
   0x2   :  { %v9_v1 = vsub.f32 1.0, %v8_v0 }
   0x4   :  { %10 = vst [vmem:[%s32_s1] sm:$0xff] %v9_v1 }

</bundles_post_ra>
